<compile_context>
chip_gen: v6e
topology: v6e:2x2x1
jax: 0.10.0
libtpu: 0.0.40
codegen_flags: <defaults>
</compile_context>

<pallas_src>
import functools

import jax
import jax.numpy as jnp
from jax.experimental import pallas as pl
from jax.experimental.pallas import tpu as pltpu

_HIDDEN = 128


def _round_up(x, m):
    return ((x + m - 1) // m) * m


def _critic_kernel(s_ref, w_in_ref, w_hid_ref, w_head2_ref, b_ref, out_ref):
    """One batch tile: 4 fused matmuls, f32 accumulate, lane-dense 128-wide store."""
    wdt = w_in_ref.dtype                      # matmul operand dtype (f32 or bf16)
    x = s_ref[...].astype(wdt)

    # feature layer: Linear -> ReLU -> Linear -> ReLU
    h = jnp.dot(x, w_in_ref[...], preferred_element_type=jnp.float32) + b_ref[:, 0:128]
    h = jnp.maximum(h, 0.0)
    h = jnp.dot(h.astype(wdt), w_hid_ref[:, 0:128],
                preferred_element_type=jnp.float32) + b_ref[:, 128:256]
    h = jnp.maximum(h, 0.0)

    # fused heads, stage 1: [value_hidden | advantage_hidden]  (N = 256)
    t = jnp.dot(h.astype(wdt), w_hid_ref[:, 128:384],
                preferred_element_type=jnp.float32) + b_ref[:, 256:512]
    t = jnp.maximum(t, 0.0)

    # fused heads, stage 2: block-diagonal (256, 128) -> [v | a | zero pad]
    out = jnp.dot(t.astype(wdt), w_head2_ref[...],
                  preferred_element_type=jnp.float32) + b_ref[:, 512:640]

    # Lane-dense store of the whole 128-wide slab; v/a split + dueling combine
    # happen in the wrapper.
    out_ref[...] = out.astype(out_ref.dtype)


@functools.partial(jax.jit, static_argnames=("action_shape", "block_b"))
def critic_forward(state, packed, action_shape, block_b=1024):
    B, obs = state.shape
    A = int(action_shape)

    # Batch tile: multiple of 8, default up to 1024; prefer >= 2 grid steps so
    # the "parallel" batch axis can shard across v7x's 2 TensorCores.
    tb = min(block_b, B)
    if B > 8 and tb >= B:
        tb = -(-B // 2)                       # ceil(B / 2)
    tb = _round_up(max(tb, 8), 8)
    b_pad = _round_up(B, tb)
    nt = b_pad // tb
    if b_pad != B:
        state = jnp.pad(state, ((0, b_pad - B), (0, 0)))

    w_in = packed["w_in"]        # (obs, 128)
    w_hid = packed["w_hidden"]   # (128, 384) = [w2 | wv1 | wa1]
    w_h2 = packed["w_head2"]     # (256, 128) block-diag [wv2 ; wa2], zero padded
    biases = packed["biases"]    # (1, 640)   f32 = [b1 | b2 | bv1 | ba1 | b_head2]

    wbytes = jnp.dtype(w_in.dtype).itemsize
    flops = 2 * b_pad * (obs * _HIDDEN            # input layer
                         + _HIDDEN * _HIDDEN      # hidden layer
                         + _HIDDEN * 2 * _HIDDEN  # fused head stage 1
                         + 2 * _HIDDEN * 128)     # fused head stage 2
    bytes_accessed = (4 * (b_pad * obs + biases.size + b_pad * 128)
                      + wbytes * (w_in.size + w_hid.size + w_h2.size))

    out = pl.pallas_call(
        _critic_kernel,
        grid=(nt,),
        in_specs=[
            pl.BlockSpec((tb, obs), lambda i: (i, 0)),               # state (pipelined)
            pl.BlockSpec((obs, _HIDDEN), lambda i: (0, 0)),          # weights stay
            pl.BlockSpec((_HIDDEN, 3 * _HIDDEN), lambda i: (0, 0)),  #  VMEM-resident
            pl.BlockSpec((2 * _HIDDEN, 128), lambda i: (0, 0)),
            pl.BlockSpec((1, 5 * _HIDDEN), lambda i: (0, 0)),
        ],
        out_specs=pl.BlockSpec((tb, 128), lambda i: (i, 0)),         # lane-dense slab
        out_shape=jax.ShapeDtypeStruct((b_pad, 128), jnp.float32),
        compiler_params=pltpu.CompilerParams(
            dimension_semantics=("parallel",),
            vmem_limit_bytes=32 * 1024 * 1024,   # v5e default (16 MiB) is too low
        ),                                       #  for tb >= 1024 double-buffering
        cost_estimate=pl.CostEstimate(flops=flops, transcendentals=0,
                                      bytes_accessed=bytes_accessed),
    )(state, w_in, w_hid, w_h2, biases)

    # Wrapper epilogue: slice valid rows, split v/a, exact torch-style GLOBAL mean.
    out = out[:B]
    v = out[:, 0:1]
    a = out[:, 1:1 + A]
    return v + (a - jnp.mean(a))


def init_critic_params(key, observation_shape, action_shape, hidden=_HIDDEN):
    """PyTorch-default-style init U(-1/sqrt(fan_in), 1/sqrt(fan_in)).
    Weights are stored transposed: (in, out); biases as (1, out)."""
    def linear(k, fan_in, fan_out):
        kw, kb = jax.random.split(k)
        bound = 1.0 / jnp.sqrt(jnp.float32(fan_in))
        w = jax.random.uniform(kw, (fan_in, fan_out), jnp.float32, -bound, bound)
        b = jax.random.uniform(kb, (1, fan_out), jnp.float32, -bound, bound)
        return w, b

    keys = jax.random.split(key, 6)
    w1, b1 = linear(keys[0], observation_shape, hidden)
    w2, b2 = linear(keys[1], hidden, hidden)
    wv1, bv1 = linear(keys[2], hidden, hidden)
    wv2, bv2 = linear(keys[3], hidden, 1)
    wa1, ba1 = linear(keys[4], hidden, hidden)
    wa2, ba2 = linear(keys[5], hidden, action_shape)
    return dict(w1=w1, b1=b1, w2=w2, b2=b2,
                wv1=wv1, bv1=bv1, wv2=wv2, bv2=bv2,
                wa1=wa1, ba1=ba1, wa2=wa2, ba2=ba2)


def pack_critic_params(params, action_shape, dtype=jnp.float32):
    """Pack the 12 linear params into 4 fused, kernel-friendly arrays.

    `dtype` controls the matmul-operand dtype of the packed weights
    (jnp.bfloat16 is MXU-native on v5e/v6e/v7x; accumulation stays f32).
    Biases are always kept in f32 so the VPU path stays f32 on v5e.
    """
    A = int(action_shape)
    assert params["w2"].shape == (_HIDDEN, _HIDDEN)

    w_in = params["w1"].astype(dtype)                               # (obs, 128)
    w_hidden = jnp.concatenate(
        [params["w2"], params["wv1"], params["wa1"]], axis=1).astype(dtype)  # (128, 384)

    # block-diagonal second head stage, zero-padded to 128 output lanes
    w_head2 = jnp.zeros((2 * _HIDDEN, 128), jnp.float32)
    w_head2 = w_head2.at[:_HIDDEN, 0:1].set(params["wv2"])
    w_head2 = w_head2.at[_HIDDEN:, 1:1 + A].set(params["wa2"])
    w_head2 = w_head2.astype(dtype)
    b_head2 = jnp.zeros((1, 128), jnp.float32)
    b_head2 = b_head2.at[:, 0:1].set(params["bv2"])
    b_head2 = b_head2.at[:, 1:1 + A].set(params["ba2"])

    biases = jnp.concatenate(
        [params["b1"], params["b2"], params["bv1"], params["ba1"], b_head2],
        axis=1).astype(jnp.float32)                                 # (1, 640)
    return dict(w_in=w_in, w_hidden=w_hidden, w_head2=w_head2, biases=biases)


def critic_reference(state, params):
    """Plain-JAX reference (unfused, f32), mirrors the PyTorch forward."""
    h = jnp.maximum(state @ params["w1"] + params["b1"], 0.0)
    h = jnp.maximum(h @ params["w2"] + params["b2"], 0.0)
    v = jnp.maximum(h @ params["wv1"] + params["bv1"], 0.0)
    v = v @ params["wv2"] + params["bv2"]
    a = jnp.maximum(h @ params["wa1"] + params["ba1"], 0.0)
    a = a @ params["wa2"] + params["ba2"]
    return v + (a - jnp.mean(a))


if __name__ == "__main__":
    OBS = 16   # observation_shape
    ACT = 4    # action_shape

    key = jax.random.PRNGKey(0)
    k_params, k_s1, k_s2 = jax.random.split(key, 3)

    params = init_critic_params(k_params, OBS, ACT)
    packed_f32 = pack_critic_params(params, ACT, dtype=jnp.float32)
    packed_bf16 = pack_critic_params(params, ACT, dtype=jnp.bfloat16)

    # Case 1: small batch -> single tile, no padding. f32 weights => exact.
    s1 = jax.random.normal(k_s1, (8, OBS), dtype=jnp.float32)
    q1 = jax.block_until_ready(critic_forward(s1, packed_f32, ACT))
    r1 = critic_reference(s1, params)
    assert q1.shape == (8, ACT)
    assert jnp.allclose(q1, r1, atol=1e-4, rtol=1e-4), "mismatch vs reference (small)"

    # Case 2: ragged larger batch -> 2-tile parallel grid, padded rows sliced off
    # in the wrapper before the global advantage mean.
    s2 = jax.random.normal(k_s2, (300, OBS), dtype=jnp.float32)
    q2 = jax.block_until_ready(critic_forward(s2, packed_f32, ACT))
    r2 = critic_reference(s2, params)
    assert q2.shape == (300, ACT)
    assert jnp.allclose(q2, r2, atol=1e-4, rtol=1e-4), "mismatch vs reference (tiled)"

    # Case 3: bf16 weights (MXU-native path), f32 accumulation; looser tolerance.
    q3 = jax.block_until_ready(critic_forward(s2, packed_bf16, ACT))
    assert q3.shape == (300, ACT)
    assert jnp.allclose(q3, r2, atol=5e-2, rtol=5e-2), "mismatch vs reference (bf16)"

    print("KERNEL_OK")
</pallas_src>

<mosaic_0001>
module attributes {stable_mosaic.version = 11 : i64} {
  func.func @_critic_kernel(%arg0: i32, %arg1: memref<8x16xf32, #tpu.memory_space<vmem>>, %arg2: memref<16x128xf32, #tpu.memory_space<vmem>>, %arg3: memref<128x384xf32, #tpu.memory_space<vmem>>, %arg4: memref<256x128xf32, #tpu.memory_space<vmem>>, %arg5: memref<1x640xf32, #tpu.memory_space<vmem>>, %arg6: memref<8x128xf32, #tpu.memory_space<vmem>>) attributes {dimension_semantics = [#tpu.dimension_semantics<parallel>], iteration_bounds = array<i64: 1>, scalar_prefetch = 0 : i64, scratch_operands = 0 : i64, tpu.core_type = #tpu.core_type<tc>, window_params = [{transform_indices = @transform_0, window_bounds = array<i64: 8, 16>}, {pipeline_mode = #tpu.pipeline_mode<synchronous>, transform_indices = @transform_1, window_bounds = array<i64: 16, 128>}, {pipeline_mode = #tpu.pipeline_mode<synchronous>, transform_indices = @transform_2, window_bounds = array<i64: 128, 384>}, {pipeline_mode = #tpu.pipeline_mode<synchronous>, transform_indices = @transform_3, window_bounds = array<i64: 256, 128>}, {pipeline_mode = #tpu.pipeline_mode<synchronous>, transform_indices = @transform_4, window_bounds = array<i64: 1, 640>}, {transform_indices = @transform_5, window_bounds = array<i64: 8, 128>}]} {
    %c0 = arith.constant 0 : index
    %c0_0 = arith.constant 0 : index
    %0 = vector.load %arg1[%c0, %c0_0] : memref<8x16xf32, #tpu.memory_space<vmem>>, vector<8x16xf32>
    %c0_1 = arith.constant 0 : index
    %c0_2 = arith.constant 0 : index
    %1 = vector.load %arg2[%c0_1, %c0_2] : memref<16x128xf32, #tpu.memory_space<vmem>>, vector<16x128xf32>
    %cst = arith.constant dense<0.000000e+00> : vector<8x128xf32>
    %2 = tpu.matmul %0, %1, %cst {dimension_numbers = #tpu.dot_dimension_numbers<[1], [0], [0], [1], [0, 0, 1, 1], [], []>} : vector<8x16xf32>, vector<16x128xf32>, vector<8x128xf32> -> vector<8x128xf32>
    %c0_3 = arith.constant 0 : index
    %c0_4 = arith.constant 0 : index
    %3 = vector.load %arg5[%c0_3, %c0_4] : memref<1x640xf32, #tpu.memory_space<vmem>>, vector<1x128xf32>
    %4 = vector.broadcast %3 : vector<1x128xf32> to vector<8x128xf32>
    %5 = arith.addf %2, %4 : vector<8x128xf32>
    %cst_5 = arith.constant 0.000000e+00 : f32
    %6 = vector.broadcast %cst_5 : f32 to vector<8x128xf32>
    %7 = arith.maximumf %5, %6 : vector<8x128xf32>
    %c0_6 = arith.constant 0 : index
    %c0_7 = arith.constant 0 : index
    %8 = vector.load %arg3[%c0_6, %c0_7] : memref<128x384xf32, #tpu.memory_space<vmem>>, vector<128x128xf32>
    %cst_8 = arith.constant dense<0.000000e+00> : vector<8x128xf32>
    %9 = tpu.matmul %7, %8, %cst_8 {dimension_numbers = #tpu.dot_dimension_numbers<[1], [0], [0], [1], [0, 0, 1, 1], [], []>} : vector<8x128xf32>, vector<128x128xf32>, vector<8x128xf32> -> vector<8x128xf32>
    %c0_9 = arith.constant 0 : index
    %c128 = arith.constant 128 : index
    %10 = vector.load %arg5[%c0_9, %c128] : memref<1x640xf32, #tpu.memory_space<vmem>>, vector<1x128xf32>
    %11 = vector.broadcast %10 : vector<1x128xf32> to vector<8x128xf32>
    %12 = arith.addf %9, %11 : vector<8x128xf32>
    %cst_10 = arith.constant 0.000000e+00 : f32
    %13 = vector.broadcast %cst_10 : f32 to vector<8x128xf32>
    %14 = arith.maximumf %12, %13 : vector<8x128xf32>
    %c0_11 = arith.constant 0 : index
    %c128_12 = arith.constant 128 : index
    %15 = vector.load %arg3[%c0_11, %c128_12] : memref<128x384xf32, #tpu.memory_space<vmem>>, vector<128x256xf32>
    %cst_13 = arith.constant dense<0.000000e+00> : vector<8x256xf32>
    %16 = tpu.matmul %14, %15, %cst_13 {dimension_numbers = #tpu.dot_dimension_numbers<[1], [0], [0], [1], [0, 0, 1, 1], [], []>} : vector<8x128xf32>, vector<128x256xf32>, vector<8x256xf32> -> vector<8x256xf32>
    %c0_14 = arith.constant 0 : index
    %c256 = arith.constant 256 : index
    %17 = vector.load %arg5[%c0_14, %c256] : memref<1x640xf32, #tpu.memory_space<vmem>>, vector<1x256xf32>
    %18 = vector.broadcast %17 : vector<1x256xf32> to vector<8x256xf32>
    %19 = arith.addf %16, %18 : vector<8x256xf32>
    %cst_15 = arith.constant 0.000000e+00 : f32
    %20 = vector.broadcast %cst_15 : f32 to vector<8x256xf32>
    %21 = arith.maximumf %19, %20 : vector<8x256xf32>
    %c0_16 = arith.constant 0 : index
    %c0_17 = arith.constant 0 : index
    %22 = vector.load %arg4[%c0_16, %c0_17] : memref<256x128xf32, #tpu.memory_space<vmem>>, vector<256x128xf32>
    %cst_18 = arith.constant dense<0.000000e+00> : vector<8x128xf32>
    %23 = tpu.matmul %21, %22, %cst_18 {dimension_numbers = #tpu.dot_dimension_numbers<[1], [0], [0], [1], [0, 0, 1, 1], [], []>} : vector<8x256xf32>, vector<256x128xf32>, vector<8x128xf32> -> vector<8x128xf32>
    %c0_19 = arith.constant 0 : index
    %c512 = arith.constant 512 : index
    %24 = vector.load %arg5[%c0_19, %c512] : memref<1x640xf32, #tpu.memory_space<vmem>>, vector<1x128xf32>
    %25 = vector.broadcast %24 : vector<1x128xf32> to vector<8x128xf32>
    %26 = arith.addf %23, %25 : vector<8x128xf32>
    %c0_20 = arith.constant 0 : index
    %c0_21 = arith.constant 0 : index
    %27 = vector.load %arg6[%c0_20, %c0_21] : memref<8x128xf32, #tpu.memory_space<vmem>>, vector<8x128xf32>
    tpu.vector_store %arg6[%c0_20, %c0_21], %26 {strides = array<i32>} : memref<8x128xf32, #tpu.memory_space<vmem>>, vector<8x128xf32>,
    return
  }
  func.func @transform_0(%arg0: i32) -> (i32, i32) {
    %c0_i32 = arith.constant 0 : i32
    %c0_i32_0 = arith.constant 0 : i32
    return %arg0, %c0_i32 : i32, i32
  }
  func.func @transform_1(%arg0: i32) -> (i32, i32) {
    %c0_i32 = arith.constant 0 : i32
    %c0_i32_0 = arith.constant 0 : i32
    %c0_i32_1 = arith.constant 0 : i32
    return %c0_i32, %c0_i32_0 : i32, i32
  }
  func.func @transform_2(%arg0: i32) -> (i32, i32) {
    %c0_i32 = arith.constant 0 : i32
    %c0_i32_0 = arith.constant 0 : i32
    %c0_i32_1 = arith.constant 0 : i32
    return %c0_i32, %c0_i32_0 : i32, i32
  }
  func.func @transform_3(%arg0: i32) -> (i32, i32) {
    %c0_i32 = arith.constant 0 : i32
    %c0_i32_0 = arith.constant 0 : i32
    %c0_i32_1 = arith.constant 0 : i32
    return %c0_i32, %c0_i32_0 : i32, i32
  }
  func.func @transform_4(%arg0: i32) -> (i32, i32) {
    %c0_i32 = arith.constant 0 : i32
    %c0_i32_0 = arith.constant 0 : i32
    %c0_i32_1 = arith.constant 0 : i32
    return %c0_i32, %c0_i32_0 : i32, i32
  }
  func.func @transform_5(%arg0: i32) -> (i32, i32) {
    %c0_i32 = arith.constant 0 : i32
    %c0_i32_0 = arith.constant 0 : i32
    return %arg0, %c0_i32 : i32, i32
  }
}

</mosaic_0001>

<bundles_post_ra>
// kernel: critic_forward.1
= control target key start
LH: loop header
LB: loop body
LE: loop exit
PB: predicated region body
PF: predicated region fallthrough
CT: control target
= control target key end

     0   :  { %10 = vsyncpa [#allocation3], 0  ;;  %s774_s0 = inlined_call_operand.hbm [shape: f32[8,16], index: 0, kind: input, shape index: {}]   ;;  %s775_s1 = inlined_call_operand.hbm [shape: f32[16,128], index: 1, kind: input, shape index: {}]   ;;  %s776_s2 = inlined_call_operand.hbm [shape: f32[128,384], index: 2, kind: input, shape index: {}]   ;;  %s777_s3 = inlined_call_operand.hbm [shape: f32[256,128], index: 3, kind: input, shape index: {}]   ;;  %s778_s4 = inlined_call_operand.hbm [shape: f32[1,640], index: 4, kind: input, shape index: {}]   ;;  %s779_s5 = inlined_call_operand.vmem [shape: f32[8,128], index: 5, kind: output, shape index: {}]  }
   0x1   :  { %11 = vsyncpa [#allocation5], 0 }
   0x2   :  { %12 = vsyncpa [#allocation8], 0  ;;  %s715_s18 = smov [#allocation4]  }
   0x3   :  { %s28_s19 = sshll.u32 %s715_s18, 4  ;;  %s29_s19 = int_to_ptr.vmem [resolvable:$true] %s28_s19 }
   0x4   :  { %s617_s20 = scalar_lea.vmem %s29_s19, 256  ;;  %p622_p1 = scmp.lt.s32.totalorder %s29_s19, %s29_s19 }
   0x5   :  { %p618_p0 = scmp.ne.s32.totalorder %s29_s19, %s617_s20  ;;  %p623_p2 = scmp.lt.s32.totalorder %s617_s20, %s617_s20 }
   0x7   :  { %p624_p3 = por %p623_p2, %p622_p1 }
   0x9   :  { %p625_p4 = pnand %p624_p3, %p618_p0 }
   0xb   :  { %628 = shalt.err (!%p625_p4)
}
   0xc   :  { %s716_s21 = smov 128   ;;  %s717_s22 = smov 8  }
   0xd   :  { %34 = dma.hbm_to_vmem [thread:$0]  %s775_s1, 256, %s29_s19, [#allocation5], %s716_s21, %s716_s21, %s717_s22  }
   0xe   :  { %s718_s25 = smov [#allocation7]   ;;  %s719_s27 = smov [#allocation2]  }
   0xf   :  { %s52_s26 = sshll.u32 %s718_s25, 4  ;;  %s19_s28 = sshll.u32 %s719_s27, 4  ;;  %s53_s26 = int_to_ptr.vmem [resolvable:$true] %s52_s26  ;;  %s20_s28 = int_to_ptr.vmem [resolvable:$true] %s19_s28 }
  0x10   :  { %s637_s29 = scalar_lea.vmem %s53_s26, 4096  ;;  %p642_p6 = scmp.lt.s32.totalorder %s53_s26, %s53_s26 }
  0x11   :  { %p638_p5 = scmp.ne.s32.totalorder %s53_s26, %s637_s29  ;;  %p643_p7 = scmp.lt.s32.totalorder %s637_s29, %s637_s29 }
  0x13   :  { %p644_p8 = por %p643_p7, %p642_p6 }
  0x15   :  { %p645_p9 = pnand %p644_p8, %p638_p5 }
  0x17   :  { %648 = shalt.err (!%p645_p9)
}
  0x18   :  { %58 = dma.hbm_to_vmem [thread:$0]  %s777_s3, 4096, %s53_s26, [#allocation8], %s716_s21, %s716_s21, %s717_s22  }
  0x19   :  { %s657_s7 = scalar_lea.vmem %s20_s28, 128  ;;  %p662_p11 = scmp.lt.s32.totalorder %s20_s28, %s20_s28 }
  0x1a   :  { %p658_p10 = scmp.ne.s32.totalorder %s20_s28, %s657_s7  ;;  %p663_p12 = scmp.lt.s32.totalorder %s657_s7, %s657_s7 }
  0x1c   :  { %p664_p13 = por %p663_p12, %p662_p11 }
  0x1e   :  { %p665_p0 = pnand %p664_p13, %p658_p10 }
  0x20   :  { %668 = shalt.err (!%p665_p0)
}
  0x21   :  { %22 = dma.hbm_to_vmem [thread:$0]  %s774_s0, 128, %s20_s28, [#allocation3]  }
  0x22   :  { %s720_s9 = smov [#allocation6]  }
  0x23   :  { %s40_s10 = sshll.u32 %s720_s9, 4  ;;  %s41_s10 = int_to_ptr.vmem [resolvable:$true] %s40_s10 }
  0x24   :  { %s677_s11 = scalar_lea.vmem %s41_s10, 6144  ;;  %p682_p2 = scmp.lt.s32.totalorder %s41_s10, %s41_s10 }
  0x25   :  { %p678_p1 = scmp.ne.s32.totalorder %s41_s10, %s677_s11  ;;  %p683_p3 = scmp.lt.s32.totalorder %s677_s11, %s677_s11 }
  0x27   :  { %p684_p4 = por %p683_p3, %p682_p2 }
  0x29   :  { %p685_p5 = pnand %p684_p4, %p678_p1 }
  0x2b   :  { %688 = shalt.err (!%p685_p5)
}
  0x2c   :  { %s721_s3 = smov 384   ;;  %s722_s12 = smov 24  }
  0x2d   :  { %46 = dma.hbm_to_vmem [thread:$0]  %s776_s2, 6144, %s41_s10, [#allocation5], %s721_s3, %s721_s3, %s722_s12  }
  0x2e   :  { %s723_s15 = smov [#allocation9]  }
  0x2f   :  { %s65_s16 = sshll.u32 %s723_s15, 4  ;;  %s66_s16 = int_to_ptr.vmem [resolvable:$true] %s65_s16 }
  0x30   :  { %s697_s0 = scalar_lea.vmem %s66_s16, 80  ;;  %s701_s17 = scalar_lea.vmem %s66_s16, 96 }
  0x31   :  { %p698_p6 = scmp.ne.s32.totalorder %s66_s16, %s697_s0  ;;  %p702_p7 = scmp.lt.s32.totalorder %s66_s16, %s66_s16 }
  0x32   :  { %p703_p8 = scmp.lt.s32.totalorder %s701_s17, %s697_s0 }
  0x34   :  { %p704_p9 = por %p703_p8, %p702_p7 }
  0x36   :  { %p705_p10 = pnand %p704_p9, %p698_p6 }
  0x38   :  { %708 = shalt.err (!%p705_p10)
}
  0x39   :  { %68 = dma.hbm_to_vmem [thread:$0]  %s778_s4, 80, %s66_s16, [#allocation8]  }
  0x3a   :  { %709 = dma.done.wait [#allocation3], 128  }
  0x3b   :  { %710 = vsyncadd [#allocation3], 4294967168 }
  0x3c   :  { %711 = dma.done.wait [#allocation5], 6400  }
  0x3d   :  { %712 = vsyncadd [#allocation5], 4294960896 }
  0x3e   :  { %713 = dma.done.wait [#allocation8], 4176  }
  0x3f   :  { %714 = vsyncadd [#allocation8], 4294963120  ;;  %v724_v0 = vmov 0.0   ;;  %vm725_vm0 = vmmov 0   ;;  %v86_v1 = vld [vmem:[#allocation4 + $0x8] sm:$0xff]  ;;  %v85_v2 = vld [vmem:[#allocation4] sm:$0xff] }
  0x40   :  { %556 = vmatprep.subr.mxu0 %v724_v0  ;;  %560 = vmatprep.mubr.msk.f32.mxu0 %vm725_vm0, %v724_v0  ;;  %v84_v3 = vld [vmem:[#allocation2] sm:$0xff]  ;;  %vm94_vm1 = vcmask 130048   ;;  %v183_v5 = vld [vmem:[#allocation6 + $0x150] sm:$0xff]  ;;  %v182_v6 = vld [vmem:[#allocation6 + $0x138] sm:$0xff] }
  0x41   :  { %563 = vmatprep.subr.mxu1 %v724_v0  ;;  %595 = vmatprep.mubr.msk.f32.mxu1 %vm725_vm0, %v724_v0  ;;  %v184_v4 = vld [vmem:[#allocation6 + $0x168] sm:$0xff]  ;;  %v181_v7 = vld [vmem:[#allocation6 + $0x120] sm:$0xff]  ;;  %v179_v9 = vld [vmem:[#allocation6 + $0xf0] sm:$0xff] }
  0x42   :  { %557 = vmatpush3.msra.mxu0 %v86_v1  ;;  %564 = vmatpush3.msra.mxu1 %v184_v4  ;;  %v180_v8 = vld [vmem:[#allocation6 + $0x108] sm:$0xff]  ;;  %v178_v10 = vld [vmem:[#allocation6 + $0xd8] sm:$0xff]  ;;  %v177_v11 = vld [vmem:[#allocation6 + $0xc0] sm:$0xff] }
  0x43   :  { %558 = vmatprep.subr.mxu0 %v724_v0  ;;  %565 = vmatprep.subr.mxu1 %v724_v0  ;;  %v176_v12 = vld [vmem:[#allocation6 + $0xa8] sm:$0xff]  ;;  %v175_v13 = vld [vmem:[#allocation6 + $0x90] sm:$0xff]  ;;  %v174_v14 = vld [vmem:[#allocation6 + $0x78] sm:$0xff] }
  0x44   :  { %559 = vmatpush3.msra.mxu0 %v85_v2  ;;  %566 = vmatpush3.msra.mxu1 %v183_v5  ;;  %v173_v15 = vld [vmem:[#allocation6 + $0x60] sm:$0xff]  ;;  %v172_v16 = vld [vmem:[#allocation6 + $0x48] sm:$0xff]  ;;  %v171_v17 = vld [vmem:[#allocation6 + $0x30] sm:$0xff] }
  0x45   :  { %561 = vmatmul.mubr.msk.f32.vlgmr.msra.gmra.mxu0 %vm94_vm1, %v84_v3  ;;  %567 = vmatprep.subr.mxu1 %v724_v0  ;;  %v170_v18 = vld [vmem:[#allocation6 + $0x18] sm:$0xff]  ;;  %v169_v19 = vld [vmem:[#allocation6] sm:$0xff]  ;;  %v293_v21 = vld [vmem:[#allocation6 + $0x170] sm:$0xff] }
  0x46   :  { %371 = vmatprep.mubr.f32.mxu0 %v724_v0  ;;  %568 = vmatpush3.msra.mxu1 %v182_v6  ;;  %v294_v20 = vld [vmem:[#allocation6 + $0x178] sm:$0xff]  ;;  %v292_v22 = vld [vmem:[#allocation6 + $0x160] sm:$0xff]  ;;  %v290_v24 = vld [vmem:[#allocation6 + $0x148] sm:$0xff] }
  0x47   :  { %569 = vmatprep.subr.mxu1 %v724_v0  ;;  %307 = vmatprep.subr.mxu0 %v294_v20  ;;  %v291_v23 = vld [vmem:[#allocation6 + $0x158] sm:$0xff]  ;;  %v289_v25 = vld [vmem:[#allocation6 + $0x140] sm:$0xff]  ;;  %v288_v26 = vld [vmem:[#allocation6 + $0x130] sm:$0xff] }
  0x48   :  { %570 = vmatpush3.msra.mxu1 %v181_v7  ;;  %308 = vmatpush1.msra.mxu0 %v293_v21  ;;  %v287_v27 = vld [vmem:[#allocation6 + $0x128] sm:$0xff]  ;;  %v286_v28 = vld [vmem:[#allocation6 + $0x118] sm:$0xff]  ;;  %v285_v29 = vld [vmem:[#allocation6 + $0x110] sm:$0xff] }
  0x49   :  { %571 = vmatprep.subr.mxu1 %v724_v0  ;;  %309 = vmatprep.subr.mxu0 %v292_v22  ;;  %v284_v30 = vld [vmem:[#allocation6 + $0x100] sm:$0xff]  ;;  %v283_v31 = vld [vmem:[#allocation6 + $0xf8] sm:$0xff]  ;;  %v282_v32 = vld [vmem:[#allocation6 + $0xe8] sm:$0xff] }
  0x4a   :  { %572 = vmatpush3.msra.mxu1 %v180_v8  ;;  %310 = vmatpush1.msra.mxu0 %v291_v23  ;;  %v281_v33 = vld [vmem:[#allocation6 + $0xe0] sm:$0xff]  ;;  %v280_v34 = vld [vmem:[#allocation6 + $0xd0] sm:$0xff]  ;;  %v279_v35 = vld [vmem:[#allocation6 + $0xc8] sm:$0xff] }
  0x4b   :  { %573 = vmatprep.subr.mxu1 %v724_v0  ;;  %311 = vmatprep.subr.mxu0 %v290_v24  ;;  %v278_v36 = vld [vmem:[#allocation6 + $0xb8] sm:$0xff]  ;;  %v277_v37 = vld [vmem:[#allocation6 + $0xb0] sm:$0xff]  ;;  %v276_v38 = vld [vmem:[#allocation6 + $0xa0] sm:$0xff] }
  0x4c   :  { %574 = vmatpush3.msra.mxu1 %v179_v9  ;;  %312 = vmatpush1.msra.mxu0 %v289_v25  ;;  %v275_v39 = vld [vmem:[#allocation6 + $0x98] sm:$0xff]  ;;  %v274_v40 = vld [vmem:[#allocation6 + $0x88] sm:$0xff]  ;;  %v273_v41 = vld [vmem:[#allocation6 + $0x80] sm:$0xff] }
  0x4d   :  { %575 = vmatprep.subr.mxu1 %v724_v0  ;;  %313 = vmatprep.subr.mxu0 %v288_v26  ;;  %v272_v42 = vld [vmem:[#allocation6 + $0x70] sm:$0xff]  ;;  %v271_v43 = vld [vmem:[#allocation6 + $0x68] sm:$0xff]  ;;  %v270_v44 = vld [vmem:[#allocation6 + $0x58] sm:$0xff] }
  0x4e   :  { %576 = vmatpush3.msra.mxu1 %v178_v10  ;;  %314 = vmatpush1.msra.mxu0 %v287_v27  ;;  %v269_v45 = vld [vmem:[#allocation6 + $0x50] sm:$0xff]  ;;  %v268_v46 = vld [vmem:[#allocation6 + $0x40] sm:$0xff]  ;;  %v267_v52 = vld [vmem:[#allocation6 + $0x38] sm:$0xff] }
  0x4f   :  { %577 = vmatprep.subr.mxu1 %v724_v0  ;;  %315 = vmatprep.subr.mxu0 %v286_v28  ;;  %v497_v47 = vld [vmem:[#allocation9] ss:$0 sm:$0xff]  ;;  %v266_v53 = vld [vmem:[#allocation6 + $0x28] sm:$0xff]  ;;  %v264_v55 = vld [vmem:[#allocation6 + $0x10] sm:$0xff] }
  0x50   :  { %578 = vmatpush3.msra.mxu1 %v177_v11  ;;  %316 = vmatpush1.msra.mxu0 %v285_v29  ;;  %v265_v54 = vld [vmem:[#allocation6 + $0x20] sm:$0xff]  ;;  %v263_v56 = vld [vmem:[#allocation6 + $0x8] sm:$0xff]  ;;  %v411_v57 = vld [vmem:[#allocation7 + $0xf8] sm:$0xff] }
  0x51   :  { %579 = vmatprep.subr.mxu1 %v724_v0  ;;  %317 = vmatprep.subr.mxu0 %v284_v30  ;;  %v395_v58 = vld [vmem:[#allocation7 + $0x78] sm:$0xff]  ;;  %v410_v59 = vld [vmem:[#allocation7 + $0xf0] sm:$0xff]  ;;  %v409_v61 = vld [vmem:[#allocation7 + $0xe8] sm:$0xff]  ;;  %v297_v30 = vlaneseq }
  0x52   :  { %580 = vmatpush3.msra.mxu1 %v176_v12  ;;  %318 = vmatpush1.msra.mxu0 %v283_v31  ;;  %v394_v60 = vld [vmem:[#allocation7 + $0x70] sm:$0xff]  ;;  %v393_v62 = vld [vmem:[#allocation7 + $0x68] sm:$0xff]  ;;  %v408_v63 = vld [vmem:[#allocation7 + $0xe0] sm:$0xff] }
  0x53   :  { %581 = vmatprep.subr.mxu1 %v724_v0  ;;  %319 = vmatprep.subr.mxu0 %v282_v32  ;;  %v407_v1 = vld [vmem:[#allocation7 + $0xd8] sm:$0xff]  ;;  %v406_v3 = vld [vmem:[#allocation7 + $0xd0] sm:$0xff]  ;;  %v405_v5 = vld [vmem:[#allocation7 + $0xc8] sm:$0xff]  ;;  %v298_v31 = vshrl.u32 %v297_v30, 7 }
  0x54   :  { %582 = vmatpush3.msra.mxu1 %v175_v13  ;;  %320 = vmatpush1.msra.mxu0 %v281_v33  ;;  %v391_v2 = vld [vmem:[#allocation7 + $0x58] sm:$0xff]  ;;  %v390_v4 = vld [vmem:[#allocation7 + $0x50] sm:$0xff]  ;;  %v389_v6 = vld [vmem:[#allocation7 + $0x48] sm:$0xff] }
  0x55   :  { %583 = vmatprep.subr.mxu1 %v724_v0  ;;  %321 = vmatprep.subr.mxu0 %v280_v34  ;;  %v404_v7 = vld [vmem:[#allocation7 + $0xc0] sm:$0xff]  ;;  %v403_v9 = vld [vmem:[#allocation7 + $0xb8] sm:$0xff]  ;;  %v402_v11 = vld [vmem:[#allocation7 + $0xb0] sm:$0xff]  ;;  %v299_v32 = vsub.s32 0, %v298_v31  ;;  %v303_v34 = vsub.s32 1, %v298_v31 }
  0x56   :  { %584 = vmatpush3.msra.mxu1 %v174_v14  ;;  %322 = vmatpush1.msra.mxu0 %v279_v35  ;;  %v388_v8 = vld [vmem:[#allocation7 + $0x40] sm:$0xff]  ;;  %v387_v10 = vld [vmem:[#allocation7 + $0x38] sm:$0xff]  ;;  %v386_v12 = vld [vmem:[#allocation7 + $0x30] sm:$0xff] }
  0x57   :  { %585 = vmatprep.subr.mxu1 %v724_v0  ;;  %323 = vmatprep.subr.mxu0 %v278_v36  ;;  %v401_v13 = vld [vmem:[#allocation7 + $0xa8] sm:$0xff]  ;;  %v399_v22 = vld [vmem:[#allocation7 + $0x98] sm:$0xff]  ;;  %v398_v24 = vld [vmem:[#allocation7 + $0x90] sm:$0xff] }
  0x58   :  { %586 = vmatpush3.msra.mxu1 %v173_v15  ;;  %324 = vmatpush1.msra.mxu0 %v277_v37  ;;  %v385_v14 = vld [vmem:[#allocation7 + $0x28] sm:$0xff]  ;;  %v400_v15 = vld [vmem:[#allocation7 + $0xa0] sm:$0xff]  ;;  %v383_v23 = vld [vmem:[#allocation7 + $0x18] sm:$0xff] }
  0x59   :  { %587 = vmatprep.subr.mxu1 %v724_v0  ;;  %325 = vmatprep.subr.mxu0 %v276_v38  ;;  %v382_v25 = vld [vmem:[#allocation7 + $0x10] sm:$0xff]  ;;  %v397_v26 = vld [vmem:[#allocation7 + $0x88] sm:$0xff]  ;;  %v396_v28 = vld [vmem:[#allocation7 + $0x80] sm:$0xff] }
  0x5a   :  { %588 = vmatpush3.msra.mxu1 %v172_v16  ;;  %326 = vmatpush1.msra.mxu0 %v275_v39  ;;  %v384_v16 = vld [vmem:[#allocation7 + $0x20] sm:$0xff]  ;;  %v381_v27 = vld [vmem:[#allocation7 + $0x8] sm:$0xff] }
  0x5b   :  { %589 = vmatprep.subr.mxu1 %v724_v0  ;;  %327 = vmatprep.subr.mxu0 %v274_v40  ;;  %v380_v29 = vld [vmem:[#allocation7] sm:$0xff] }
  0x5c   :  { %590 = vmatpush3.msra.mxu1 %v171_v17  ;;  %328 = vmatpush1.msra.mxu0 %v273_v41  ;;  %v499_v17 = vld [vmem:[#allocation9 + $0x1] ss:$0 sm:$0xff]  ;;  %v295_v33 = vld [vmem:[#allocation9 + $0x2] sm:$0x3] }
  0x5d   :  { %591 = vmatprep.subr.mxu1 %v724_v0  ;;  %329 = vmatprep.subr.mxu0 %v272_v42  ;;  %v300_v35 = vrot.slane %v295_v33, %v299_v32  ;;  %v304_v36 = vrot.slane %v295_v33, %v303_v34 }
  0x5e   :  { %592 = vmatpush3.msra.mxu1 %v170_v18  ;;  %330 = vmatpush1.msra.mxu0 %v271_v43 }
  0x5f   :  { %593 = vmatprep.subr.mxu1 %v724_v0  ;;  %331 = vmatprep.subr.mxu0 %v270_v44  ;;  %v392_v0 = vld [vmem:[#allocation7 + $0x60] sm:$0xff] }
  0x60   :  { %594 = vmatpush3.msra.mxu1 %v169_v19  ;;  %332 = vmatpush1.msra.mxu0 %v269_v45  ;;  %v500_v44 = vld [vmem:[#allocation9 + $0x4] ss:$0 sm:$0xff] }
  0x61   :  { %333 = vmatprep.subr.mxu0 %v268_v46  ;;  %521 = vmatprep.subr.mxu1 %v411_v57 }
  0x62   :  { %334 = vmatpush1.msra.mxu0 %v267_v52 }
  0x63   :  { %335 = vmatprep.subr.mxu0 %v266_v53 }
  0x64   :  { %336 = vmatpush1.msra.mxu0 %v265_v54 }
  0x65   :  { %337 = vmatprep.subr.mxu0 %v264_v55 }
  0x66   :  { %338 = vmatpush1.msra.mxu0 %v263_v56 }
 0x105   :  { %v164_v48 = vpop.f32.mrf.mxu0 }
 0x106   :  { %v165_v49 = vadd.f32 %v497_v47, %v164_v48 }
 0x107   :  { %v562_v50 = vpop.f32.mrf.mxu0 }
 0x108   :  { %v168_v51 = vmax.f32 %v165_v49, 0.0 }
 0x10a   :  { %596 = vmatmul.mubr.f32.vlgmr.msra.gmra.mxu1 %v168_v51 }
 0x10b   :  { %522 = vmatpush3.msra.mxu1 %v395_v58 }
 0x10c   :  { %523 = vmatprep.subr.mxu1 %v410_v59 }
 0x10d   :  { %524 = vmatpush3.msra.mxu1 %v394_v60 }
 0x10e   :  { %525 = vmatprep.subr.mxu1 %v409_v61 }
 0x10f   :  { %526 = vmatpush3.msra.mxu1 %v393_v62 }
 0x110   :  { %527 = vmatprep.subr.mxu1 %v408_v63 }
 0x111   :  { %528 = vmatpush3.msra.mxu1 %v392_v0 }
 0x112   :  { %529 = vmatprep.subr.mxu1 %v407_v1 }
 0x113   :  { %530 = vmatpush3.msra.mxu1 %v391_v2 }
 0x114   :  { %531 = vmatprep.subr.mxu1 %v406_v3 }
 0x115   :  { %532 = vmatpush3.msra.mxu1 %v390_v4 }
 0x116   :  { %533 = vmatprep.subr.mxu1 %v405_v5 }
 0x117   :  { %534 = vmatpush3.msra.mxu1 %v389_v6 }
 0x118   :  { %535 = vmatprep.subr.mxu1 %v404_v7 }
 0x119   :  { %536 = vmatpush3.msra.mxu1 %v388_v8 }
 0x11a   :  { %537 = vmatprep.subr.mxu1 %v403_v9 }
 0x11b   :  { %538 = vmatpush3.msra.mxu1 %v387_v10 }
 0x11c   :  { %539 = vmatprep.subr.mxu1 %v402_v11 }
 0x11d   :  { %540 = vmatpush3.msra.mxu1 %v386_v12 }
 0x11e   :  { %541 = vmatprep.subr.mxu1 %v401_v13 }
 0x11f   :  { %542 = vmatpush3.msra.mxu1 %v385_v14 }
 0x120   :  { %543 = vmatprep.subr.mxu1 %v400_v15 }
 0x121   :  { %544 = vmatpush3.msra.mxu1 %v384_v16 }
 0x122   :  { %545 = vmatprep.subr.mxu1 %v399_v22 }
 0x123   :  { %546 = vmatpush3.msra.mxu1 %v383_v23 }
 0x124   :  { %547 = vmatprep.subr.mxu1 %v398_v24 }
 0x125   :  { %548 = vmatpush3.msra.mxu1 %v382_v25 }
 0x126   :  { %549 = vmatprep.subr.mxu1 %v397_v26 }
 0x127   :  { %550 = vmatpush3.msra.mxu1 %v381_v27 }
 0x128   :  { %551 = vmatprep.subr.mxu1 %v396_v28 }
 0x129   :  { %552 = vmatpush3.msra.mxu1 %v380_v29 }
 0x1ca   :  { %v258_v18 = vpop.f32.mrf.mxu1 }
 0x1cb   :  { %v259_v19 = vadd.f32 %v499_v17, %v258_v18 }
 0x1cc   :  { %v597_v20 = vpop.f32.mrf.mxu1 }
 0x1cd   :  { %v262_v21 = vmax.f32 %v259_v19, 0.0 }
 0x1cf   :  { %372 = vmatmul.mubr.f32.vlgmr.msra.gmra.mxu0 %v262_v21 }
 0x28f   :  { %v373_v37 = vpop.f32.mrf.mxu0 }
 0x290   :  { %v374_v38 = vadd.f32 %v373_v37, %v300_v35 }
 0x291   :  { %v375_v39 = vpop.f32.mrf.mxu0 }
 0x292   :  { %v376_v40 = vadd.f32 %v375_v39, %v304_v36  ;;  %v378_v42 = vmax.f32 %v374_v38, 0.0 }
 0x294   :  { %v379_v41 = vmax.f32 %v376_v40, 0.0 }
 0x296   :  { %483 = vmatprep.mubr.f32.mxu1 %v379_v41 }
 0x297   :  { %484 = vmatmul.mubr.f32.vlgmr.msra.gmra.mxu1 %v378_v42 }
 0x357   :  { %v553_v43 = vpop.f32.mrf.mxu1 }
 0x359   :  { %v554_v45 = vpop.f32.mrf.mxu1 }
 0x35a   :  { %v555_v46 = vadd.f32 %v554_v45, %v553_v43 }
 0x35c   :  { %v486_v47 = vadd.f32 %v555_v46, %v500_v44 }
 0x35e   :  { %489 = vst [vmem:[%s779_s5] sm:$0xff] %v486_v47 }
 0x35f   :  { %494 = vsyncpa [#allocation3], 1 }
 0x360   :  { %495 = vsyncpa [#allocation5], 1 }
 0x361   :  { %496 = vsyncpa [#allocation8], 1 }

</bundles_post_ra>
